<compile_context>
chip_gen: v5e
topology: v5e:2x2
jax: 0.10.0
libtpu: 0.0.40
codegen_flags: <defaults>
</compile_context>

<pallas_src>
import jax
import jax.numpy as jnp
from jax.experimental import pallas as pl
from jax.experimental.pallas import tpu as pltpu


_TM_CAP = 512  # ~85% of HBM roofline at 512 rows; larger only wastes VMEM /
               # creates padding and 1-2 step grids (no pipelining, no megacore).


def _round_up(x, m):
    return ((x + m - 1) // m) * m


def _patch_embed_kernel(x_ref, w_ref, b_ref, o_ref):
    # x_ref: (TM, K)      patch-matrix tile (compute dtype, usually bf16)
    # w_ref: (K, E_pad)   projection weight, constant block -> stays in VMEM
    # b_ref: (1, E_pad)   bias (f32)
    # o_ref: (TM, E_pad)  output tile (out dtype, usually bf16)
    acc = jnp.dot(x_ref[...], w_ref[...], preferred_element_type=jnp.float32)
    o_ref[...] = (acc + b_ref[...]).astype(o_ref.dtype)


def _vmem_budget_bytes():
    """Per-TensorCore VMEM budget (half of physical, capped at 64 MiB)."""
    try:
        cap = pltpu.get_tpu_info().vmem_capacity_bytes
    except Exception:
        cap = 64 << 20          # conservative fallback (v7x is 64 MiB per TC)
    return int(min(cap // 2, 64 << 20))


def _vmem_bytes(tm, k, e_pad, in_bytes, out_bytes):
    """Conservative VMEM estimate for one kernel instance."""
    return (2 * tm * k * in_bytes          # X tile, double-buffered
            + 2 * k * e_pad * in_bytes     # weight (counted double to be safe)
            + 2 * e_pad * 4                # bias
            + 2 * tm * e_pad * out_bytes   # output tile, double-buffered
            + tm * e_pad * 4)              # f32 matmul accumulator temp


def _pick_tile_m(m, k, e_pad, in_bytes, out_bytes, vmem_budget):
    """Pick the M tile: prefer a tile that divides M exactly (zero padding,
    no post-kernel slice), near the HBM-roofline sweet spot, and small enough
    that double-buffered tiles + the resident weight fit in VMEM."""
    headroom = 6 << 20                     # Mosaic internal scratch etc.

    def fits(tm):
        return _vmem_bytes(tm, k, e_pad, in_bytes, out_bytes) <= vmem_budget - headroom

    cap = _TM_CAP
    while cap > 128 and not fits(cap):
        cap -= 128
    cap = max(cap, 128)

    if m <= cap:
        return m                           # single full-extent block (legal for any m)

    # 1) Largest divisor of M (multiple of 8, <= cap): zero padding, no slice.
    for tm in range(cap, 127, -8):
        if m % tm == 0 and fits(tm):
            return tm

    # 2) Fallback: 128-granular tile with minimal padding (larger tile wins ties).
    best, best_pad = None, None
    for tm in range(cap - cap % 128, 127, -128):
        if not fits(tm):
            continue
        pad = _round_up(m, tm) - m
        if best is None or pad < best_pad:
            best, best_pad = tm, pad
    return best if best is not None else 128


def prepare_patch_embed_params(weight, bias, *, param_dtype=jnp.bfloat16):
    """Convert Conv2d weight (E, C, P, P) / bias (E,) into the kernel layout:
    wt (K, E_pad) in param_dtype and b2 (1, E_pad) f32, E_pad = round_up(E, 128)
    for lane-dense MXU feeds and unmasked output stores.  Call once and reuse
    (hoists the transpose/pad/cast out of the per-call path)."""
    E, C, P, _ = weight.shape
    K = C * P * P
    E_pad = _round_up(E, 128)
    wt = weight.reshape(E, K).T.astype(param_dtype)   # (K, E)
    b2 = bias.reshape(1, E).astype(jnp.float32)
    if E_pad != E:
        wt = jnp.pad(wt, ((0, 0), (0, E_pad - E)))
        b2 = jnp.pad(b2, ((0, 0), (0, E_pad - E)))
    return wt, b2


def patch_embed_prepared(x, wt, b2, embed_dim, patch_size, *,
                         compute_dtype=jnp.bfloat16, out_dtype=None):
    """PatchEmbed forward with pre-prepared (K, E_pad) weight / (1, E_pad) bias.

    Returns (B, n_patches, embed_dim) in out_dtype (default: compute_dtype)."""
    B, C, H, W = x.shape
    P = patch_size
    Hp, Wp = H // P, W // P
    n_patches = Hp * Wp
    K = C * P * P
    M = B * n_patches
    E = embed_dim
    E_pad = wt.shape[1]
    if out_dtype is None:
        out_dtype = compute_dtype

    # --- patch unfold (layout glue; one XLA transpose copy) -----------------
    # Cast to the compute dtype FIRST so the materialized copy is written in
    # bf16, not f32 (halves the write side of this mem-bound step).
    xp = x.astype(compute_dtype).reshape(B, C, Hp, P, Wp, P)
    xp = jnp.transpose(xp, (0, 2, 4, 1, 3, 5)).reshape(M, K)
    # K is deliberately left unpadded: it is the full array dim of the block
    # (legal), and padding the activation would cost another full M*K copy.

    in_bytes = jnp.dtype(compute_dtype).itemsize
    out_bytes = jnp.dtype(out_dtype).itemsize
    vmem_budget = _vmem_budget_bytes()

    TM = _pick_tile_m(M, K, E_pad, in_bytes, out_bytes, vmem_budget)
    M_pad = _round_up(M, TM)
    if M_pad != M:                          # only when no exact divisor exists
        xp = jnp.pad(xp, ((0, M_pad - M), (0, 0)))

    grid = (M_pad // TM,)

    cost = pl.CostEstimate(
        flops=2 * M_pad * K * E_pad,
        transcendentals=0,
        bytes_accessed=(M_pad * K * in_bytes            # patch matrix read
                        + K * E_pad * in_bytes          # weight read once
                        + E_pad * 4                     # bias
                        + M_pad * E_pad * out_bytes),   # output write
    )

    out = pl.pallas_call(
        _patch_embed_kernel,
        out_shape=jax.ShapeDtypeStruct((M_pad, E_pad), out_dtype),
        grid_spec=pltpu.PrefetchScalarGridSpec(
            num_scalar_prefetch=0,
            grid=grid,
            in_specs=[
                pl.BlockSpec((TM, K), lambda i: (i, 0)),     # moves with grid
                # Constant index_map: no per-step DMA re-issue; buffer stays
                # resident in VMEM.  (pl.Buffered(1) would save one extra copy
                # of W; skipped for lowering-compat safety -- the VMEM budget
                # above already accounts for two copies.)
                pl.BlockSpec((K, E_pad), lambda i: (0, 0)),
                pl.BlockSpec((1, E_pad), lambda i: (0, 0)),
            ],
            out_specs=pl.BlockSpec((TM, E_pad), lambda i: (i, 0)),
        ),
        compiler_params=pltpu.CompilerParams(
            dimension_semantics=("parallel",),    # megacore sharding on v7x
            vmem_limit_bytes=vmem_budget,
        ),
        cost_estimate=cost,
    )(xp, wt, b2)

    if M_pad != M or E_pad != E:
        out = out[:M, :E]
    return out.reshape(B, n_patches, E)


def patch_embed(x, weight, bias, patch_size, *, compute_dtype=jnp.bfloat16,
                out_dtype=None):
    """Convenience wrapper taking the raw Conv2d weight (E, C, P, P) / bias (E,).

    For repeated calls, hoist prepare_patch_embed_params() and call
    patch_embed_prepared() directly."""
    wt, b2 = prepare_patch_embed_params(weight, bias, param_dtype=compute_dtype)
    return patch_embed_prepared(x, wt, b2, weight.shape[0], patch_size,
                                compute_dtype=compute_dtype, out_dtype=out_dtype)


def _reference(x, weight, bias, patch_size):
    B, C, H, W = x.shape
    E = weight.shape[0]
    P = patch_size
    Hp, Wp = H // P, W // P
    xp = x.reshape(B, C, Hp, P, Wp, P)
    xp = jnp.transpose(xp, (0, 2, 4, 1, 3, 5)).reshape(B * Hp * Wp, C * P * P)
    return (xp @ weight.reshape(E, -1).T + bias).reshape(B, Hp * Wp, E)


if __name__ == "__main__":
    key = jax.random.PRNGKey(0)

    # --- config 1: small shapes matching the module spec style --------------
    # batch=2, in_chans=4, img_size=16, patch_size=4, embedding_dimension=32
    B, C, IMG, P, E = 2, 4, 16, 4, 32
    k1, k2, k3, key = jax.random.split(key, 4)
    x = jax.random.normal(k1, (B, C, IMG, IMG), dtype=jnp.float32)
    weight = jax.random.normal(k2, (E, C, P, P), dtype=jnp.float32) * 0.02
    bias = jax.random.normal(k3, (E,), dtype=jnp.float32) * 0.02
    ref = _reference(x, weight, bias, P)
    n_patches = (IMG // P) ** 2

    # f32 compute + f32 output: bit-tight check (opt-in path).
    out_f32 = jax.block_until_ready(
        patch_embed(x, weight, bias, P,
                    compute_dtype=jnp.float32, out_dtype=jnp.float32))
    assert out_f32.shape == (B, n_patches, E)
    assert jnp.allclose(out_f32, ref, atol=1e-5, rtol=1e-5)

    # Default production path: bf16 compute, f32 accumulate, bf16 output.
    out_bf16 = jax.block_until_ready(patch_embed(x, weight, bias, P))
    assert out_bf16.shape == (B, n_patches, E)
    assert out_bf16.dtype == jnp.bfloat16
    assert jnp.allclose(out_bf16.astype(jnp.float32), ref, atol=3e-2, rtol=3e-2)

    # --- config 2: exercises the multi-step grid (TM divides M, zero pad) ---
    B2, C2, IMG2, P2, E2 = 4, 3, 64, 4, 128   # M = 4*256 = 1024 -> TM=512, grid=(2,)
    k1, k2, k3, key = jax.random.split(key, 4)
    x2 = jax.random.normal(k1, (B2, C2, IMG2, IMG2), dtype=jnp.float32)
    w2 = jax.random.normal(k2, (E2, C2, P2, P2), dtype=jnp.float32) * 0.02
    b2 = jax.random.normal(k3, (E2,), dtype=jnp.float32) * 0.02
    ref2 = _reference(x2, w2, b2, P2)
    out2 = jax.block_until_ready(patch_embed(x2, w2, b2, P2))
    assert out2.shape == (B2, (IMG2 // P2) ** 2, E2)
    assert jnp.allclose(out2.astype(jnp.float32), ref2, atol=3e-2, rtol=3e-2)

    print("KERNEL_OK")
</pallas_src>

<mosaic_0001>
module attributes {stable_mosaic.version = 11 : i64} {
  func.func @_patch_embed_kernel(%arg0: i32, %arg1: memref<32x64xf32, #tpu.memory_space<vmem>>, %arg2: memref<64x128xf32, #tpu.memory_space<vmem>>, %arg3: memref<1x128xf32, #tpu.memory_space<vmem>>, %arg4: memref<32x128xf32, #tpu.memory_space<vmem>>) attributes {dimension_semantics = [#tpu.dimension_semantics<parallel>], iteration_bounds = array<i64: 1>, scalar_prefetch = 0 : i64, scratch_operands = 0 : i64, tpu.core_type = #tpu.core_type<tc>, window_params = [{transform_indices = @transform_0, window_bounds = array<i64: 32, 64>}, {pipeline_mode = #tpu.pipeline_mode<synchronous>, transform_indices = @transform_1, window_bounds = array<i64: 64, 128>}, {pipeline_mode = #tpu.pipeline_mode<synchronous>, transform_indices = @transform_2, window_bounds = array<i64: 1, 128>}, {transform_indices = @transform_3, window_bounds = array<i64: 32, 128>}]} {
    %c0 = arith.constant 0 : index
    %c0_0 = arith.constant 0 : index
    %0 = vector.load %arg1[%c0, %c0_0] : memref<32x64xf32, #tpu.memory_space<vmem>>, vector<32x64xf32>
    %c0_1 = arith.constant 0 : index
    %c0_2 = arith.constant 0 : index
    %1 = vector.load %arg2[%c0_1, %c0_2] : memref<64x128xf32, #tpu.memory_space<vmem>>, vector<64x128xf32>
    %cst = arith.constant dense<0.000000e+00> : vector<32x128xf32>
    %2 = tpu.matmul %0, %1, %cst {dimension_numbers = #tpu.dot_dimension_numbers<[1], [0], [0], [1], [0, 0, 1, 1], [], []>} : vector<32x64xf32>, vector<64x128xf32>, vector<32x128xf32> -> vector<32x128xf32>
    %c0_3 = arith.constant 0 : index
    %c0_4 = arith.constant 0 : index
    %3 = vector.load %arg3[%c0_3, %c0_4] : memref<1x128xf32, #tpu.memory_space<vmem>>, vector<1x128xf32>
    %4 = vector.broadcast %3 : vector<1x128xf32> to vector<32x128xf32>
    %5 = arith.addf %2, %4 : vector<32x128xf32>
    %c0_5 = arith.constant 0 : index
    %c0_6 = arith.constant 0 : index
    %6 = vector.load %arg4[%c0_5, %c0_6] : memref<32x128xf32, #tpu.memory_space<vmem>>, vector<32x128xf32>
    tpu.vector_store %arg4[%c0_5, %c0_6], %5 {strides = array<i32>} : memref<32x128xf32, #tpu.memory_space<vmem>>, vector<32x128xf32>,
    return
  }
  func.func @transform_0(%arg0: i32) -> (i32, i32) {
    %c0_i32 = arith.constant 0 : i32
    %c0_i32_0 = arith.constant 0 : i32
    return %arg0, %c0_i32 : i32, i32
  }
  func.func @transform_1(%arg0: i32) -> (i32, i32) {
    %c0_i32 = arith.constant 0 : i32
    %c0_i32_0 = arith.constant 0 : i32
    %c0_i32_1 = arith.constant 0 : i32
    return %c0_i32, %c0_i32_0 : i32, i32
  }
  func.func @transform_2(%arg0: i32) -> (i32, i32) {
    %c0_i32 = arith.constant 0 : i32
    %c0_i32_0 = arith.constant 0 : i32
    %c0_i32_1 = arith.constant 0 : i32
    return %c0_i32, %c0_i32_0 : i32, i32
  }
  func.func @transform_3(%arg0: i32) -> (i32, i32) {
    %c0_i32 = arith.constant 0 : i32
    %c0_i32_0 = arith.constant 0 : i32
    return %arg0, %c0_i32 : i32, i32
  }
}

</mosaic_0001>

<bundles_post_ra>
// kernel: tpu_custom_call.1
= control target key start
LH: loop header
LB: loop body
LE: loop exit
PB: predicated region body
PF: predicated region fallthrough
CT: control target
= control target key end

     0   :  { %8 = vsyncpa [#allocation3], 0  ;;  %s287_s0 = inlined_call_operand.hbm [shape: f32[32,64], index: 0, kind: input, shape index: {}]   ;;  %s288_s1 = inlined_call_operand.hbm [shape: f32[64,128], index: 1, kind: input, shape index: {}]   ;;  %s289_s2 = inlined_call_operand.vmem [shape: f32[1,128], index: 2, kind: input, shape index: {}]   ;;  %s290_s3 = inlined_call_operand.hbm [shape: f32[32,128], index: 3, kind: output, shape index: {}]  }
   0x1   :  { %9 = vsyncpa [#allocation6], 0 }
   0x2   :  { %10 = vsyncpa [#allocation4], 0  ;;  %s15_s14 = sshll.u32 %s287_s0, 4  ;;  %s241_s15 = smov [#allocation2]   ;;  %s16_s14 = int_to_ptr.hbm [resolvable:$true] %s15_s14 }
   0x3   :  { %s17_s16 = sshll.u32 %s241_s15, 4  ;;  %s28_s19 = sshll.u32 %s288_s1, 4  ;;  %s18_s16 = int_to_ptr.vmem [resolvable:$true] %s17_s16  ;;  %s29_s19 = int_to_ptr.hbm [resolvable:$true] %s28_s19 }
   0x4   :  { %s242_s20 = smov 128   ;;  %s243_s21 = smov 8  }
   0x5   :  { %23 = dma.hbm_to_vmem [thread:$0]  %s16_s14, 512, %s18_s16, [#allocation3], %s242_s20, %s242_s20, %s243_s21  }
   0x6   :  { %s244_s22 = smov [#allocation5]  }
   0x7   :  { %s30_s23 = sshll.u32 %s244_s22, 4  ;;  %s31_s23 = int_to_ptr.vmem [resolvable:$true] %s30_s23 }
   0x8   :  { %36 = dma.hbm_to_vmem [thread:$0]  %s29_s19, 1024, %s31_s23, [#allocation6], %s242_s20, %s242_s20, %s243_s21  }
   0x9   :  { %235 = dma.done.wait [#allocation3], 512  }
   0xa   :  { %236 = vsyncadd [#allocation3], 4294966784 }
   0xb   :  { %237 = dma.done.wait [#allocation6], 1024  }
   0xc   :  { %238 = vsyncadd [#allocation6], 4294966272  ;;  %v58_v0 = vld [vmem:[#allocation5 + $0x38] sm:$0xff]  ;;  %v57_v1 = vld [vmem:[#allocation5 + $0x30] sm:$0xff]  ;;  %vm63_vm0 = vcmask 523264   ;;  %s245_s24 = smov [#allocation7]  }
   0xd   :  { %134 = vmatpush.msra.mxu2 %v58_v0  ;;  %135 = vmatpush.msra.mxu3 %v58_v0  ;;  %v56_v2 = vld [vmem:[#allocation5 + $0x28] sm:$0xff]  ;;  %v55_v3 = vld [vmem:[#allocation5 + $0x20] sm:$0xff]  ;;  %v54_v4 = vld [vmem:[#allocation5 + $0x18] sm:$0xff]  ;;  %s113_s25 = sshll.u32 %s245_s24, 4  ;;  %s115_s28 = sshll.u32 %s290_s3, 4  ;;  %s114_s25 = int_to_ptr.vmem [resolvable:$true] %s113_s25  ;;  %s116_s28 = int_to_ptr.hbm [resolvable:$true] %s115_s28 }
   0xe   :  { %84 = vmatpush.msra.mxu0 %v58_v0  ;;  %133 = vmatpush.msra.mxu1 %v58_v0  ;;  %v53_v5 = vld [vmem:[#allocation5 + $0x10] sm:$0xff]  ;;  %v52_v6 = vld [vmem:[#allocation5 + $0x8] sm:$0xff]  ;;  %v51_v7 = vld [vmem:[#allocation5] sm:$0xff] }
   0xf   :  { %137 = vmatpush.msra.mxu2 %v57_v1  ;;  %138 = vmatpush.msra.mxu3 %v57_v1  ;;  %v49_v8 = vld [vmem:[#allocation2 + $0x10] sm:$0xff]  ;;  %v50_v9 = vld [vmem:[#allocation2 + $0x18] sm:$0xff]  ;;  %v47_v10 = vld [vmem:[#allocation2] sm:$0xff] }
  0x10   :  { %85 = vmatpush.msra.mxu0 %v57_v1  ;;  %136 = vmatpush.msra.mxu1 %v57_v1  ;;  %v48_v11 = vld [vmem:[#allocation2 + $0x8] sm:$0xff]  ;;  %v162_v12 = vld [vmem:[%s289_s2] ss:$0 sm:$0xff] }
  0x11   :  { %140 = vmatpush.msra.mxu2 %v56_v2  ;;  %141 = vmatpush.msra.mxu3 %v56_v2 }
  0x12   :  { %86 = vmatpush.msra.mxu0 %v56_v2  ;;  %139 = vmatpush.msra.mxu1 %v56_v2 }
  0x13   :  { %143 = vmatpush.msra.mxu2 %v55_v3  ;;  %144 = vmatpush.msra.mxu3 %v55_v3 }
  0x14   :  { %87 = vmatpush.msra.mxu0 %v55_v3  ;;  %142 = vmatpush.msra.mxu1 %v55_v3 }
  0x15   :  { %146 = vmatpush.msra.mxu2 %v54_v4  ;;  %147 = vmatpush.msra.mxu3 %v54_v4 }
  0x16   :  { %88 = vmatpush.msra.mxu0 %v54_v4  ;;  %145 = vmatpush.msra.mxu1 %v54_v4 }
  0x17   :  { %149 = vmatpush.msra.mxu2 %v53_v5  ;;  %150 = vmatpush.msra.mxu3 %v53_v5 }
  0x18   :  { %89 = vmatpush.msra.mxu0 %v53_v5  ;;  %148 = vmatpush.msra.mxu1 %v53_v5 }
  0x19   :  { %152 = vmatpush.msra.mxu2 %v52_v6  ;;  %153 = vmatpush.msra.mxu3 %v52_v6 }
  0x1a   :  { %90 = vmatpush.msra.mxu0 %v52_v6  ;;  %151 = vmatpush.msra.mxu1 %v52_v6 }
  0x1b   :  { %155 = vmatpush.msra.mxu2 %v51_v7  ;;  %156 = vmatpush.msra.mxu3 %v51_v7 }
  0x1c   :  { %131 = vmatmul.msk.f32.vlgmr.msra.gmra.mxu2 %vm63_vm0, %v49_v8  ;;  %132 = vmatmul.msk.f32.vlgmr.msra.gmra.mxu3 %vm63_vm0, %v50_v9 }
  0x1d   :  { %91 = vmatpush.msra.mxu0 %v51_v7  ;;  %154 = vmatpush.msra.mxu1 %v51_v7 }
  0x1e   :  { %129 = vmatmul.msk.f32.vlgmr.msra.gmra.mxu0 %vm63_vm0, %v47_v10  ;;  %130 = vmatmul.msk.f32.vlgmr.msra.gmra.mxu1 %vm63_vm0, %v48_v11 }
  0x9b   :  { %v93_v13 = vpop.f32.mrf.mxu0  ;;  %v96_v14 = vpop.f32.mrf.mxu1 }
  0x9c   :  { %v94_v15 = vadd.f32 %v162_v12, %v93_v13  ;;  %v97_v16 = vadd.f32 %v162_v12, %v96_v14 }
  0x9e   :  { %105 = vst [vmem:[#allocation7] sm:$0xff] %v94_v15 }
  0x9f   :  { %106 = vst [vmem:[#allocation7 + $0x8] sm:$0xff] %v97_v16  ;;  %v99_v17 = vpop.f32.mrf.mxu2  ;;  %v102_v18 = vpop.f32.mrf.mxu3 }
  0xa0   :  { %v100_v19 = vadd.f32 %v162_v12, %v99_v17  ;;  %v103_v20 = vadd.f32 %v162_v12, %v102_v18 }
  0xa2   :  { %107 = vst [vmem:[#allocation7 + $0x10] sm:$0xff] %v100_v19 }
  0xa3   :  { %108 = vst [vmem:[#allocation7 + $0x18] sm:$0xff] %v103_v20 }
  0xa4   :  { %121 = dma.vmem_to_hbm [thread:$0]  %s114_s25, 512, %s116_s28, [#allocation4], %s242_s20, %s242_s20, %s243_s21  }
  0xa5   :  { %239 = dma.done.wait [#allocation4], 512  }
  0xa6   :  { %240 = vsyncadd [#allocation4], 4294966784 }
  0xa7   :  { %126 = vsyncpa [#allocation3], 1 }
  0xa8   :  { %127 = vsyncpa [#allocation6], 1 }
  0xa9   :  { %128 = vsyncpa [#allocation4], 1 }

</bundles_post_ra>
